<compile_context>
chip_gen: v6e
topology: v6e:2x2x1
jax: 0.10.0
libtpu: 0.0.40
codegen_flags: <defaults>
</compile_context>

<pallas_src>
import jax
import jax.numpy as jnp
from jax.experimental import pallas as pl
from jax.experimental.pallas import tpu as pltpu

PROTOTYPE_SIZE = 10
NUM_PROTOTYPES = 10


def net_kernel(x_ref, w_ref, b_ref, out_ref):
    """Fused forward pass.

    x_ref  : (B, PAD)        input, zero-padded to PAD lanes
    w_ref  : (8, PAD, PAD)   [ew1, ew2, ew3, dw1, dw2, dw3, prototypes.T, proto_logits]
    b_ref  : (7, 1, PAD)     [eb1, eb2, eb3, db1, db2, db3, ||p_j||^2 row (BIG in pad cols)]
    out_ref: (B, 4*PAD)      [ transform | recon | head_out | prototype_difs ] lane-concat
    """
    x = x_ref[...]

    def lin(h, i):
        return jnp.dot(h, w_ref[i], preferred_element_type=jnp.float32) + b_ref[i]

    # ---- Autoencoder.encode ----
    h = jnp.maximum(lin(x, 0), 0.0)
    h = jnp.maximum(lin(h, 1), 0.0)
    t = jnp.maximum(lin(h, 2), 0.0)                 # transform_input (B, PAD)

    # ---- Autoencoder.decode ----
    d = jnp.maximum(lin(t, 3), 0.0)
    d = jnp.maximum(lin(d, 4), 0.0)
    recon = lin(d, 5)                               # recon_input (B, PAD), valid cols [:obs]

    # ---- pairwise squared distances (||p||^2 precomputed, prototypes pre-transposed) ----
    protos_t = w_ref[6]                             # (PAD, PAD) = prototypes.T (zero-padded)
    plog = w_ref[7]                                 # (PAD, PAD) = protos @ fcw + fcb (zero-padded)
    pp = b_ref[6]                                   # (1, PAD)   squared norms, BIG in pad cols
    tt = jnp.sum(t * t, axis=1, keepdims=True)                               # (B, 1)
    cross = jnp.dot(t, protos_t, preferred_element_type=jnp.float32)         # (B, PAD)
    pdifs = tt + pp - 2.0 * cross                   # list_of_distances(t, prototypes)

    # ---- argmin over prototypes (first-min semantics) + fused head via one-hot matmul ----
    B, npad = pdifs.shape
    col = jax.lax.broadcasted_iota(jnp.int32, (B, npad), 1)
    minv = jnp.min(pdifs, axis=1, keepdims=True)
    idx = jnp.min(jnp.where(pdifs == minv, col, npad), axis=1, keepdims=True)  # (B, 1)
    onehot = (col == idx).astype(jnp.float32)                                   # (B, PAD)
    head = jnp.dot(onehot, plog, preferred_element_type=jnp.float32)            # (B, PAD)

    # ---- single lane-concatenated store -> one writeback DMA ----
    out_ref[...] = jnp.concatenate([t, recon, head, pdifs], axis=1)


def net_forward(x, params):
    B, obs = x.shape
    A = params["fcw"].shape[1]
    PS, NP = PROTOTYPE_SIZE, NUM_PROTOTYPES
    PAD = max(PS, NP, obs, A)                       # common lane width for all packed slabs

    def place(m, shape):
        return jnp.zeros(shape, jnp.float32).at[:m.shape[0], :m.shape[1]].set(m)

    protos = params["prototypes"]
    # Parameter-only precompute (hoisted out of the kernel).
    proto_logits = protos @ params["fcw"] + params["fcb"]              # (NP, A)
    pp = jnp.sum(protos * protos, axis=1, keepdims=True).T             # (1, NP)

    # Packed weight slab: 8 x (PAD, PAD).  (In a training loop, cache this packing.)
    w_stack = jnp.stack([
        place(params["ew1"], (PAD, PAD)),
        place(params["ew2"], (PAD, PAD)),
        place(params["ew3"], (PAD, PAD)),
        place(params["dw1"], (PAD, PAD)),
        place(params["dw2"], (PAD, PAD)),
        place(params["dw3"], (PAD, PAD)),
        place(protos.T,      (PAD, PAD)),
        place(proto_logits,  (PAD, PAD)),
    ])                                                                 # (8, PAD, PAD)

    # Padded-prototype squared norms set to BIG so pad columns never win the argmin.
    pp_row = jnp.full((1, PAD), 1e30, jnp.float32).at[:, :NP].set(pp)
    b_stack = jnp.stack([
        place(params["eb1"], (1, PAD)),
        place(params["eb2"], (1, PAD)),
        place(params["eb3"], (1, PAD)),
        place(params["db1"], (1, PAD)),
        place(params["db2"], (1, PAD)),
        place(params["db3"], (1, PAD)),
        pp_row,
    ])                                                                 # (7, 1, PAD)

    x_pad = place(x, (B, PAD))

    vmem = pl.BlockSpec(memory_space=pltpu.MemorySpace.VMEM)
    slab = pl.pallas_call(
        net_kernel,
        out_shape=jax.ShapeDtypeStruct((B, 4 * PAD), jnp.float32),
        in_specs=[vmem, vmem, vmem],
        out_specs=vmem,
    )(x_pad, w_stack, b_stack)

    transform_input = slab[:, :PS]
    recon_input = slab[:, PAD:PAD + obs]
    output = slab[:, 2 * PAD:2 * PAD + A]
    prototypes_difs = slab[:, 3 * PAD:3 * PAD + NP]
    feature_difs = prototypes_difs.T        # fdifs == pdifs.T (fp-commutative), no kernel work
    return (transform_input, recon_input, protos, output,
            prototypes_difs, feature_difs)


def init_params(key, observation_size, action_size):
    """Deterministic parameter init (uniform, PyTorch-Linear-style bounds)."""
    def linear(k, fan_in, fan_out):
        k1, k2 = jax.random.split(k)
        bound = 1.0 / (fan_in ** 0.5)
        w = jax.random.uniform(k1, (fan_in, fan_out), jnp.float32, -bound, bound)
        b = jax.random.uniform(k2, (1, fan_out), jnp.float32, -bound, bound)
        return w, b

    keys = jax.random.split(key, 8)
    p = {}
    p["ew1"], p["eb1"] = linear(keys[0], observation_size, PROTOTYPE_SIZE)
    p["ew2"], p["eb2"] = linear(keys[1], PROTOTYPE_SIZE, PROTOTYPE_SIZE)
    p["ew3"], p["eb3"] = linear(keys[2], PROTOTYPE_SIZE, PROTOTYPE_SIZE)
    p["dw1"], p["db1"] = linear(keys[3], PROTOTYPE_SIZE, PROTOTYPE_SIZE)
    p["dw2"], p["db2"] = linear(keys[4], PROTOTYPE_SIZE, PROTOTYPE_SIZE)
    p["dw3"], p["db3"] = linear(keys[5], PROTOTYPE_SIZE, observation_size)
    p["prototypes"] = jax.random.uniform(
        keys[6], (NUM_PROTOTYPES, PROTOTYPE_SIZE), jnp.float32, 0.0, 1.0)  # torch.rand
    p["fcw"], p["fcb"] = linear(keys[7], PROTOTYPE_SIZE, action_size)
    return p


def net_reference(x, p):
    """Pure-JAX reference (mirrors the PyTorch forward) for validation."""
    def lin(h, w, b):
        return h @ w + b
    h = jax.nn.relu(lin(x, p["ew1"], p["eb1"]))
    h = jax.nn.relu(lin(h, p["ew2"], p["eb2"]))
    t = jax.nn.relu(lin(h, p["ew3"], p["eb3"]))
    d = jax.nn.relu(lin(t, p["dw1"], p["db1"]))
    d = jax.nn.relu(lin(d, p["dw2"], p["db2"]))
    recon = lin(d, p["dw3"], p["db3"])
    protos = p["prototypes"]
    tt = jnp.sum(t * t, axis=1, keepdims=True)
    pp = jnp.sum(protos * protos, axis=1, keepdims=True)
    pdifs = tt + pp.T - 2.0 * (t @ protos.T)
    fdifs = pp + tt.T - 2.0 * (protos @ t.T)
    best = protos[jnp.argmin(pdifs, axis=1)]
    out = lin(best, p["fcw"], p["fcb"])
    return t, recon, protos, out, pdifs, fdifs


if __name__ == "__main__":
    observation_size = 4   # cartpole observation
    action_size = 2        # cartpole actions
    B = 8                  # small batch

    key = jax.random.PRNGKey(0)
    k_param, k_x = jax.random.split(key)
    params = init_params(k_param, observation_size, action_size)
    x = jax.random.normal(k_x, (B, observation_size), dtype=jnp.float32)

    results = net_forward(x, params)
    results = jax.block_until_ready(results)

    ref = net_reference(x, params)
    for got, want in zip(results, ref):
        assert got.shape == want.shape, (got.shape, want.shape)
        assert jnp.allclose(got, want, rtol=1e-4, atol=1e-4), "mismatch vs reference"

    print("KERNEL_OK")
</pallas_src>

<mosaic_0001>
module attributes {stable_mosaic.version = 11 : i64} {
  func.func @net_kernel(%arg0: memref<8x10xf32, #tpu.memory_space<vmem>>, %arg1: memref<8x10x10xf32, #tpu.memory_space<vmem>>, %arg2: memref<7x1x10xf32, #tpu.memory_space<vmem>>, %arg3: memref<8x40xf32, #tpu.memory_space<vmem>>) attributes {dimension_semantics = [], scalar_prefetch = 0 : i64, scratch_operands = 0 : i64, tpu.core_type = #tpu.core_type<tc>} {
    %c0 = arith.constant 0 : index
    %c0_0 = arith.constant 0 : index
    %0 = vector.load %arg0[%c0, %c0_0] : memref<8x10xf32, #tpu.memory_space<vmem>>, vector<8x10xf32>
    %c0_1 = arith.constant 0 : index
    %c0_2 = arith.constant 0 : index
    %c0_3 = arith.constant 0 : index
    %1 = vector.load %arg1[%c0_1, %c0_2, %c0_3] : memref<8x10x10xf32, #tpu.memory_space<vmem>>, vector<1x10x10xf32>
    %2 = vector.shape_cast %1 : vector<1x10x10xf32> to vector<10x10xf32>
    %cst = arith.constant dense<0.000000e+00> : vector<8x10xf32>
    %3 = tpu.matmul %0, %2, %cst {dimension_numbers = #tpu.dot_dimension_numbers<[1], [0], [0], [1], [0, 0, 1, 1], [], []>} : vector<8x10xf32>, vector<10x10xf32>, vector<8x10xf32> -> vector<8x10xf32>
    %c0_4 = arith.constant 0 : index
    %c0_5 = arith.constant 0 : index
    %c0_6 = arith.constant 0 : index
    %4 = vector.load %arg2[%c0_4, %c0_5, %c0_6] : memref<7x1x10xf32, #tpu.memory_space<vmem>>, vector<1x1x10xf32>
    %5 = vector.shape_cast %4 : vector<1x1x10xf32> to vector<1x10xf32>
    %6 = vector.broadcast %5 : vector<1x10xf32> to vector<8x10xf32>
    %7 = arith.addf %3, %6 : vector<8x10xf32>
    %cst_7 = arith.constant 0.000000e+00 : f32
    %8 = vector.broadcast %cst_7 : f32 to vector<8x10xf32>
    %9 = arith.maximumf %7, %8 : vector<8x10xf32>
    %c1 = arith.constant 1 : index
    %c0_8 = arith.constant 0 : index
    %c0_9 = arith.constant 0 : index
    %10 = vector.load %arg1[%c1, %c0_8, %c0_9] : memref<8x10x10xf32, #tpu.memory_space<vmem>>, vector<1x10x10xf32>
    %11 = vector.shape_cast %10 : vector<1x10x10xf32> to vector<10x10xf32>
    %cst_10 = arith.constant dense<0.000000e+00> : vector<8x10xf32>
    %12 = tpu.matmul %9, %11, %cst_10 {dimension_numbers = #tpu.dot_dimension_numbers<[1], [0], [0], [1], [0, 0, 1, 1], [], []>} : vector<8x10xf32>, vector<10x10xf32>, vector<8x10xf32> -> vector<8x10xf32>
    %c1_11 = arith.constant 1 : index
    %c0_12 = arith.constant 0 : index
    %c0_13 = arith.constant 0 : index
    %13 = vector.load %arg2[%c1_11, %c0_12, %c0_13] : memref<7x1x10xf32, #tpu.memory_space<vmem>>, vector<1x1x10xf32>
    %14 = vector.shape_cast %13 : vector<1x1x10xf32> to vector<1x10xf32>
    %15 = vector.broadcast %14 : vector<1x10xf32> to vector<8x10xf32>
    %16 = arith.addf %12, %15 : vector<8x10xf32>
    %cst_14 = arith.constant 0.000000e+00 : f32
    %17 = vector.broadcast %cst_14 : f32 to vector<8x10xf32>
    %18 = arith.maximumf %16, %17 : vector<8x10xf32>
    %c2 = arith.constant 2 : index
    %c0_15 = arith.constant 0 : index
    %c0_16 = arith.constant 0 : index
    %19 = vector.load %arg1[%c2, %c0_15, %c0_16] : memref<8x10x10xf32, #tpu.memory_space<vmem>>, vector<1x10x10xf32>
    %20 = vector.shape_cast %19 : vector<1x10x10xf32> to vector<10x10xf32>
    %cst_17 = arith.constant dense<0.000000e+00> : vector<8x10xf32>
    %21 = tpu.matmul %18, %20, %cst_17 {dimension_numbers = #tpu.dot_dimension_numbers<[1], [0], [0], [1], [0, 0, 1, 1], [], []>} : vector<8x10xf32>, vector<10x10xf32>, vector<8x10xf32> -> vector<8x10xf32>
    %c2_18 = arith.constant 2 : index
    %c0_19 = arith.constant 0 : index
    %c0_20 = arith.constant 0 : index
    %22 = vector.load %arg2[%c2_18, %c0_19, %c0_20] : memref<7x1x10xf32, #tpu.memory_space<vmem>>, vector<1x1x10xf32>
    %23 = vector.shape_cast %22 : vector<1x1x10xf32> to vector<1x10xf32>
    %24 = vector.broadcast %23 : vector<1x10xf32> to vector<8x10xf32>
    %25 = arith.addf %21, %24 : vector<8x10xf32>
    %cst_21 = arith.constant 0.000000e+00 : f32
    %26 = vector.broadcast %cst_21 : f32 to vector<8x10xf32>
    %27 = arith.maximumf %25, %26 : vector<8x10xf32>
    %c3 = arith.constant 3 : index
    %c0_22 = arith.constant 0 : index
    %c0_23 = arith.constant 0 : index
    %28 = vector.load %arg1[%c3, %c0_22, %c0_23] : memref<8x10x10xf32, #tpu.memory_space<vmem>>, vector<1x10x10xf32>
    %29 = vector.shape_cast %28 : vector<1x10x10xf32> to vector<10x10xf32>
    %cst_24 = arith.constant dense<0.000000e+00> : vector<8x10xf32>
    %30 = tpu.matmul %27, %29, %cst_24 {dimension_numbers = #tpu.dot_dimension_numbers<[1], [0], [0], [1], [0, 0, 1, 1], [], []>} : vector<8x10xf32>, vector<10x10xf32>, vector<8x10xf32> -> vector<8x10xf32>
    %c3_25 = arith.constant 3 : index
    %c0_26 = arith.constant 0 : index
    %c0_27 = arith.constant 0 : index
    %31 = vector.load %arg2[%c3_25, %c0_26, %c0_27] : memref<7x1x10xf32, #tpu.memory_space<vmem>>, vector<1x1x10xf32>
    %32 = vector.shape_cast %31 : vector<1x1x10xf32> to vector<1x10xf32>
    %33 = vector.broadcast %32 : vector<1x10xf32> to vector<8x10xf32>
    %34 = arith.addf %30, %33 : vector<8x10xf32>
    %cst_28 = arith.constant 0.000000e+00 : f32
    %35 = vector.broadcast %cst_28 : f32 to vector<8x10xf32>
    %36 = arith.maximumf %34, %35 : vector<8x10xf32>
    %c4 = arith.constant 4 : index
    %c0_29 = arith.constant 0 : index
    %c0_30 = arith.constant 0 : index
    %37 = vector.load %arg1[%c4, %c0_29, %c0_30] : memref<8x10x10xf32, #tpu.memory_space<vmem>>, vector<1x10x10xf32>
    %38 = vector.shape_cast %37 : vector<1x10x10xf32> to vector<10x10xf32>
    %cst_31 = arith.constant dense<0.000000e+00> : vector<8x10xf32>
    %39 = tpu.matmul %36, %38, %cst_31 {dimension_numbers = #tpu.dot_dimension_numbers<[1], [0], [0], [1], [0, 0, 1, 1], [], []>} : vector<8x10xf32>, vector<10x10xf32>, vector<8x10xf32> -> vector<8x10xf32>
    %c4_32 = arith.constant 4 : index
    %c0_33 = arith.constant 0 : index
    %c0_34 = arith.constant 0 : index
    %40 = vector.load %arg2[%c4_32, %c0_33, %c0_34] : memref<7x1x10xf32, #tpu.memory_space<vmem>>, vector<1x1x10xf32>
    %41 = vector.shape_cast %40 : vector<1x1x10xf32> to vector<1x10xf32>
    %42 = vector.broadcast %41 : vector<1x10xf32> to vector<8x10xf32>
    %43 = arith.addf %39, %42 : vector<8x10xf32>
    %cst_35 = arith.constant 0.000000e+00 : f32
    %44 = vector.broadcast %cst_35 : f32 to vector<8x10xf32>
    %45 = arith.maximumf %43, %44 : vector<8x10xf32>
    %c5 = arith.constant 5 : index
    %c0_36 = arith.constant 0 : index
    %c0_37 = arith.constant 0 : index
    %46 = vector.load %arg1[%c5, %c0_36, %c0_37] : memref<8x10x10xf32, #tpu.memory_space<vmem>>, vector<1x10x10xf32>
    %47 = vector.shape_cast %46 : vector<1x10x10xf32> to vector<10x10xf32>
    %cst_38 = arith.constant dense<0.000000e+00> : vector<8x10xf32>
    %48 = tpu.matmul %45, %47, %cst_38 {dimension_numbers = #tpu.dot_dimension_numbers<[1], [0], [0], [1], [0, 0, 1, 1], [], []>} : vector<8x10xf32>, vector<10x10xf32>, vector<8x10xf32> -> vector<8x10xf32>
    %c5_39 = arith.constant 5 : index
    %c0_40 = arith.constant 0 : index
    %c0_41 = arith.constant 0 : index
    %49 = vector.load %arg2[%c5_39, %c0_40, %c0_41] : memref<7x1x10xf32, #tpu.memory_space<vmem>>, vector<1x1x10xf32>
    %50 = vector.shape_cast %49 : vector<1x1x10xf32> to vector<1x10xf32>
    %51 = vector.broadcast %50 : vector<1x10xf32> to vector<8x10xf32>
    %52 = arith.addf %48, %51 : vector<8x10xf32>
    %c6 = arith.constant 6 : index
    %c0_42 = arith.constant 0 : index
    %c0_43 = arith.constant 0 : index
    %53 = vector.load %arg1[%c6, %c0_42, %c0_43] : memref<8x10x10xf32, #tpu.memory_space<vmem>>, vector<1x10x10xf32>
    %54 = vector.shape_cast %53 : vector<1x10x10xf32> to vector<10x10xf32>
    %c7 = arith.constant 7 : index
    %c0_44 = arith.constant 0 : index
    %c0_45 = arith.constant 0 : index
    %55 = vector.load %arg1[%c7, %c0_44, %c0_45] : memref<8x10x10xf32, #tpu.memory_space<vmem>>, vector<1x10x10xf32>
    %56 = vector.shape_cast %55 : vector<1x10x10xf32> to vector<10x10xf32>
    %c6_46 = arith.constant 6 : index
    %c0_47 = arith.constant 0 : index
    %c0_48 = arith.constant 0 : index
    %57 = vector.load %arg2[%c6_46, %c0_47, %c0_48] : memref<7x1x10xf32, #tpu.memory_space<vmem>>, vector<1x1x10xf32>
    %58 = vector.shape_cast %57 : vector<1x1x10xf32> to vector<1x10xf32>
    %59 = arith.mulf %27, %27 : vector<8x10xf32>
    %cst_49 = arith.constant dense<0.000000e+00> : vector<8xf32>
    %60 = vector.multi_reduction <add>, %59, %cst_49 [1] : vector<8x10xf32> to vector<8xf32>
    %61 = vector.shape_cast %60 : vector<8xf32> to vector<8x1xf32>
    %cst_50 = arith.constant dense<0.000000e+00> : vector<8x10xf32>
    %62 = tpu.matmul %27, %54, %cst_50 {dimension_numbers = #tpu.dot_dimension_numbers<[1], [0], [0], [1], [0, 0, 1, 1], [], []>} : vector<8x10xf32>, vector<10x10xf32>, vector<8x10xf32> -> vector<8x10xf32>
    %63 = vector.broadcast %61 : vector<8x1xf32> to vector<8x10xf32>
    %64 = vector.broadcast %58 : vector<1x10xf32> to vector<8x10xf32>
    %65 = arith.addf %63, %64 : vector<8x10xf32>
    %cst_51 = arith.constant 2.000000e+00 : f32
    %66 = vector.broadcast %cst_51 : f32 to vector<8x10xf32>
    %67 = arith.mulf %66, %62 : vector<8x10xf32>
    %68 = arith.subf %65, %67 : vector<8x10xf32>
    %69 = tpu.iota {dimensions = array<i32: 1>} : vector<8x10xi32>
    %cst_52 = arith.constant dense<0x7F800000> : vector<8xf32>
    %70 = vector.multi_reduction <minimumf>, %68, %cst_52 [1] : vector<8x10xf32> to vector<8xf32>
    %71 = vector.shape_cast %70 : vector<8xf32> to vector<8x1xf32>
    %72 = vector.broadcast %71 : vector<8x1xf32> to vector<8x10xf32>
    %73 = arith.cmpf oeq, %68, %72 : vector<8x10xf32>
    %c10_i32 = arith.constant 10 : i32
    %74 = vector.broadcast %c10_i32 : i32 to vector<8x10xi32>
    %75 = arith.select %73, %69, %74 : vector<8x10xi1>, vector<8x10xi32>
    %cst_53 = arith.constant dense<2147483647> : vector<8xi32>
    %76 = vector.multi_reduction <minsi>, %75, %cst_53 [1] : vector<8x10xi32> to vector<8xi32>
    %77 = vector.shape_cast %76 : vector<8xi32> to vector<8x1xi32>
    %78 = vector.broadcast %77 : vector<8x1xi32> to vector<8x10xi32>
    %79 = arith.cmpi eq, %69, %78 : vector<8x10xi32>
    %80 = arith.extui %79 : vector<8x10xi1> to vector<8x10xi32>
    %81 = arith.sitofp %80 : vector<8x10xi32> to vector<8x10xf32>
    %cst_54 = arith.constant dense<0.000000e+00> : vector<8x10xf32>
    %82 = tpu.matmul %81, %56, %cst_54 {dimension_numbers = #tpu.dot_dimension_numbers<[1], [0], [0], [1], [0, 0, 1, 1], [], []>} : vector<8x10xf32>, vector<10x10xf32>, vector<8x10xf32> -> vector<8x10xf32>
    %83 = tpu.concatenate %27, %52, %82, %68 in 1 : vector<8x10xf32>, vector<8x10xf32>, vector<8x10xf32>, vector<8x10xf32> -> vector<8x40xf32>
    %c0_55 = arith.constant 0 : index
    %c0_56 = arith.constant 0 : index
    %84 = vector.load %arg3[%c0_55, %c0_56] : memref<8x40xf32, #tpu.memory_space<vmem>>, vector<8x40xf32>
    tpu.vector_store %arg3[%c0_55, %c0_56], %83 {strides = array<i32>} : memref<8x40xf32, #tpu.memory_space<vmem>>, vector<8x40xf32>,
    return
  }
}

</mosaic_0001>

<bundles_post_ra>
// kernel: tpu_custom_call.1
= control target key start
LH: loop header
LB: loop body
LE: loop exit
PB: predicated region body
PF: predicated region fallthrough
CT: control target
= control target key end

     0   :  { %vm29_vm0 = vcmask 1041408   ;;  %v923_v1 = vmov 0.0   ;;  %vm924_vm1 = vmmov 0   ;;  %s1084_s0 = inlined_call_operand.vmem [shape: f32[8,10], index: 0, kind: input, shape index: {}]   ;;  %s1085_s1 = inlined_call_operand.vmem [shape: f32[8,10,10], index: 1, kind: input, shape index: {}]   ;;  %s1086_s2 = inlined_call_operand.vmem [shape: f32[7,1,10], index: 2, kind: input, shape index: {}]   ;;  %s1087_s3 = inlined_call_operand.hbm [shape: f32[8,40], index: 3, kind: output, shape index: {}]  }
   0x1   :  { %v17_v0 = vld [vmem:[%s1085_s1 + $0x8] sm:$0x3]  ;;  %839 = vmatprep.subr.mxu0 %v923_v1  ;;  %v16_v2 = vld [vmem:[%s1085_s1] sm:$0xff]  ;;  %843 = vmatprep.mubr.msk.f32.mxu0 %vm924_vm1, %v923_v1 }
   0x2   :  { %8 = vsyncpa [#allocation3], 0  ;;  %840 = vmatpush3.msk.msra.mxu0 %vm29_vm0, %v17_v0  ;;  %v15_v3 = vld [vmem:[%s1084_s0] sm:$0xff]  ;;  %vm25_vm2 = vcmask 80896   ;;  %846 = vmatprep.subr.mxu1 %v923_v1  ;;  %v775_v4 = vld [vmem:[%s1085_s1 + $0x18] sm:$0x3]  ;;  %v637_v51 = vlaneseq }
   0x3   :  { %841 = vmatprep.subr.mxu0 %v923_v1  ;;  %850 = vmatprep.mubr.msk.f32.mxu1 %vm924_vm1, %v923_v1  ;;  %v774_v5 = vld [vmem:[%s1085_s1 + $0x10] sm:$0xff]  ;;  %v771_v6 = vld [vmem:[%s1086_s2] ss:$0 sm:$0xff]  ;;  %v781_v11 = vld [vmem:[%s1085_s1 + $0x28] sm:$0x3]  ;;  %s925_s27 = smov 10  }
   0x4   :  { %842 = vmatpush3.msra.mxu0 %v16_v2  ;;  %847 = vmatpush3.msk.msra.mxu1 %vm29_vm0, %v775_v4  ;;  %v780_v12 = vld [vmem:[%s1085_s1 + $0x20] sm:$0xff]  ;;  %v787_v18 = vld [vmem:[%s1085_s1 + $0x38] sm:$0x3]  ;;  %v786_v19 = vld [vmem:[%s1085_s1 + $0x30] sm:$0xff]  ;;  %v638_v52 = vand.u32 127, %v637_v51  ;;  %s926_s4 = smov 20  }
   0x5   :  { %844 = vmatmul.mubr.msk.f32.vlgmr.msra.gmra.mxu0 %vm25_vm2, %v15_v3  ;;  %853 = vmatprep.subr.mxu0 %v923_v1  ;;  %v777_v13 = vld [vmem:[%s1086_s2 + $0x1] ss:$0 sm:$0xff]  ;;  %v783_v20 = vld [vmem:[%s1086_s2 + $0x2] ss:$0 sm:$0xff]  ;;  %v793_v27 = vld [vmem:[%s1085_s1 + $0x48] sm:$0x3] }
   0x6   :  { %857 = vmatprep.mubr.msk.f32.mxu0 %vm924_vm1, %v923_v1  ;;  %848 = vmatprep.subr.mxu1 %v923_v1  ;;  %v792_v28 = vld [vmem:[%s1085_s1 + $0x40] sm:$0xff]  ;;  %v805_v34 = vld [vmem:[%s1085_s1 + $0x68] sm:$0x3]  ;;  %v799_v36 = vld [vmem:[%s1085_s1 + $0x58] sm:$0x3]  ;;  %s927_s5 = smov 30  }
   0x7   :  { %849 = vmatpush3.msra.mxu1 %v774_v5  ;;  %854 = vmatpush3.msk.msra.mxu0 %vm29_vm0, %v781_v11  ;;  %v789_v29 = vld [vmem:[%s1086_s2 + $0x3] ss:$0 sm:$0xff]  ;;  %v798_v37 = vld [vmem:[%s1085_s1 + $0x50] sm:$0xff]  ;;  %v795_v38 = vld [vmem:[%s1086_s2 + $0x4] ss:$0 sm:$0xff]  ;;  %vm751_vm6 = vcmask 162816  }
   0x8   :  { %860 = vmatprep.subr.mxu1 %v923_v1  ;;  %855 = vmatprep.subr.mxu0 %v923_v1  ;;  %v804_v35 = vld [vmem:[%s1085_s1 + $0x60] sm:$0xff]  ;;  %v807_v3 = vld [vmem:[%s1085_s1 + $0x78] sm:$0x3]  ;;  %v806_v4 = vld [vmem:[%s1085_s1 + $0x70] sm:$0xff]  ;;  %s928_s1 = smov [#allocation2]   ;;  %vm753_vm7 = vcmask 244736  }
   0x9   :  { %856 = vmatpush3.msra.mxu0 %v780_v12  ;;  %v811_v41 = vld [vmem:[%s1086_s2 + $0x6] ss:$0 sm:$0xff]  ;;  %v801_v58 = vld [vmem:[%s1086_s2 + $0x5] ss:$0 sm:$0xff]  ;;  %s763_s6 = sshll.u32 %s928_s1, 4  ;;  %vm755_vm8 = vcmask 326656   ;;  %s764_s6 = int_to_ptr.vmem [resolvable:$true] %s763_s6 }
   0xa   :  { %867 = vmatprep.subr.mxu0 %v923_v1  ;;  %s901_s7 = scalar_lea.vmem %s764_s6, 128  ;;  %p906_p1 = scmp.lt.s32.totalorder %s764_s6, %s764_s6 }
   0xb   :  { %p902_p0 = scmp.ne.s32.totalorder %s764_s6, %s901_s7  ;;  %p907_p2 = scmp.lt.s32.totalorder %s901_s7, %s901_s7 }
   0xd   :  { %p908_p3 = por %p907_p2, %p906_p1 }
   0xf   :  { %p909_p4 = pnand %p908_p3, %p902_p0 }
  0xc5   :  { %v99_v7 = vpop.f32.mrf.mxu0 }
  0xc6   :  { %v100_v8 = vadd.f32 %v771_v6, %v99_v7 }
  0xc7   :  { %v845_v9 = vpop.f32.mrf.mxu0 }
  0xc8   :  { %v103_v10 = vmax.f32 %v100_v8, 0.0 }
  0xca   :  { %851 = vmatmul.mubr.msk.f32.vlgmr.msra.gmra.mxu1 %vm25_vm2, %v103_v10 }
  0xcb   :  { %864 = vmatprep.mubr.msk.f32.mxu1 %vm924_vm1, %v923_v1  ;;  %861 = vmatpush3.msk.msra.mxu1 %vm29_vm0, %v787_v18 }
  0xcc   :  { %862 = vmatprep.subr.mxu1 %v923_v1 }
  0xcd   :  { %863 = vmatpush3.msra.mxu1 %v786_v19 }
  0xce   :  { %874 = vmatprep.subr.mxu1 %v923_v1 }
 0x18a   :  { %v187_v14 = vpop.f32.mrf.mxu1 }
 0x18b   :  { %v188_v15 = vadd.f32 %v777_v13, %v187_v14 }
 0x18c   :  { %v852_v16 = vpop.f32.mrf.mxu1 }
 0x18d   :  { %v191_v17 = vmax.f32 %v188_v15, 0.0 }
 0x18f   :  { %858 = vmatmul.mubr.msk.f32.vlgmr.msra.gmra.mxu0 %vm25_vm2, %v191_v17 }
 0x190   :  { %871 = vmatprep.mubr.msk.f32.mxu0 %vm924_vm1, %v923_v1  ;;  %868 = vmatpush3.msk.msra.mxu0 %vm29_vm0, %v793_v27 }
 0x191   :  { %869 = vmatprep.subr.mxu0 %v923_v1 }
 0x192   :  { %870 = vmatpush3.msra.mxu0 %v792_v28 }
 0x193   :  { %881 = vmatprep.subr.mxu0 %v923_v1 }
 0x24f   :  { %v275_v21 = vpop.f32.mrf.mxu0 }
 0x250   :  { %v276_v22 = vadd.f32 %v783_v20, %v275_v21 }
 0x251   :  { %v859_v23 = vpop.f32.mrf.mxu0 }
 0x252   :  { %v1012_v24 = vmax.f32 %v276_v22, 0.0 }
 0x254   :  { %865 = vmatmul.mubr.msk.f32.vlgmr.msra.gmra.mxu1 %vm25_vm2, %v1012_v24  ;;  %v551_v25 = vmul.f32 %v1012_v24, %v1012_v24 }
 0x255   :  { %878 = vmatprep.mubr.msk.f32.mxu1 %vm924_vm1, %v923_v1  ;;  %875 = vmatpush3.msk.msra.mxu1 %vm29_vm0, %v799_v36 }
 0x256   :  { %v552_v26 = vsel %vm25_vm2, %v551_v25, 0.0  ;;  %876 = vmatprep.subr.mxu1 %v923_v1 }
 0x257   :  { %553 = vadd.xlane.f32.xlu0 %v552_v26  ;;  %877 = vmatpush3.msra.mxu1 %v798_v37 }
 0x258   :  { %888 = vmatprep.subr.mxu1 %v923_v1 }
 0x2e0   :  { %v554_v42 = vpop.xlane.xlu0 %553 }
 0x2e1   :  { %v634_v46 = vadd.f32 %v811_v41, %v554_v42 }
 0x314   :  { %v363_v30 = vpop.f32.mrf.mxu1 }
 0x315   :  { %v364_v31 = vadd.f32 %v789_v29, %v363_v30 }
 0x316   :  { %v866_v32 = vpop.f32.mrf.mxu1 }
 0x317   :  { %v367_v33 = vmax.f32 %v364_v31, 0.0 }
 0x319   :  { %872 = vmatmul.mubr.msk.f32.vlgmr.msra.gmra.mxu0 %vm25_vm2, %v367_v33 }
 0x31a   :  { %882 = vmatpush3.msk.msra.mxu0 %vm29_vm0, %v805_v34  ;;  %885 = vmatprep.mubr.msk.f32.mxu0 %vm924_vm1, %v923_v1 }
 0x31b   :  { %883 = vmatprep.subr.mxu0 %v923_v1 }
 0x31c   :  { %884 = vmatpush3.msra.mxu0 %v804_v35 }
 0x31d   :  { %886 = vmatmul.mubr.msk.f32.vlgmr.msra.gmra.mxu0 %vm25_vm2, %v1012_v24 }
 0x3d9   :  { %v451_v39 = vpop.f32.mrf.mxu0 }
 0x3da   :  { %v452_v40 = vadd.f32 %v795_v38, %v451_v39 }
 0x3db   :  { %v873_v43 = vpop.f32.mrf.mxu0 }
 0x3dc   :  { %v455_v44 = vmax.f32 %v452_v40, 0.0 }
 0x3dd   :  { %v624_v45 = vpop.f32.mrf.mxu0 }
 0x3de   :  { %v635_v47 = vmul.f32 2.0, %v624_v45  ;;  %879 = vmatmul.mubr.msk.f32.vlgmr.msra.gmra.mxu1 %vm25_vm2, %v455_v44 }
 0x3df   :  { %v887_v48 = vpop.f32.mrf.mxu0  ;;  %892 = vmatprep.mubr.msk.f32.mxu1 %vm924_vm1, %v923_v1  ;;  %889 = vmatpush3.msk.msra.mxu1 %vm29_vm0, %v807_v3 }
 0x3e0   :  { %v636_v49 = vsub.f32 %v634_v46, %v635_v47  ;;  %890 = vmatprep.subr.mxu1 %v923_v1 }
 0x3e1   :  { %891 = vmatpush3.msra.mxu1 %v806_v4 }
 0x3e2   :  { %v639_v50 = vsel %vm25_vm2, %v636_v49, inf }
 0x3e3   :  { %640 = vmin.xlane.f32.xlu0 %v639_v50 }
 0x46c   :  { %v641_v53 = vpop.xlane.xlu0 %640 }
 0x46d   :  { %vm642_vm3 = vcmp.eq.f32.partialorder %v636_v49, %v641_v53 }
 0x46e   :  { %v643_v54 = vsel %vm642_vm3, %v638_v52, 10 }
 0x46f   :  { %v644_v55 = vsel %vm25_vm2, %v643_v54, 2147483647 }
 0x470   :  { %v646_v56 = vshra.s32 %v644_v55, 16  ;;  %v645_v62 = vand.u32 65535, %v644_v55 }
 0x472   :  { %v648_v57 = vcvt.s32.f32 %v646_v56  ;;  %v647_v0 = vcvt.s32.f32 %v645_v62 }
 0x474   :  { %649 = vmin.xlane.f32.xlu1 %v648_v57 }
 0x49e   :  { %v539_v59 = vpop.f32.mrf.mxu1 }
 0x49f   :  { %v540_v60 = vadd.f32 %v801_v58, %v539_v59 }
 0x4a0   :  { %v880_v61 = vpop.f32.mrf.mxu1 }
 0x4a1   :  { %739 = vrot.lane.b32.xlu0 %v540_v60, %s925_s27 }
 0x4fd   :  { %v650_v63 = vpop.xlane.xlu1 %649 }
 0x4fe   :  { %vm651_vm4 = vcmp.eq.f32.partialorder %v648_v57, %v650_v63  ;;  %v656_v5 = vcvt.f32.s32 %v650_v63 }
 0x4ff   :  { %v652_v2 = vsel %vm651_vm4, %v647_v0, inf }
 0x500   :  { %653 = vmin.xlane.f32.xlu1 %v652_v2  ;;  %v657_v7 = vshll.u32 %v656_v5, 16 }
 0x513   :  { %v740_v13 = vpop.permute.xlu0 %739 }
 0x514   :  { %v750_v15 = vsel %vm25_vm2, %v1012_v24, %v740_v13 }
 0x589   :  { %v654_v6 = vpop.xlane.xlu1 %653 }
 0x58a   :  { %v655_v8 = vcvt.f32.s32 %v654_v6 }
 0x58c   :  { %v658_v9 = vadd.s32 %v657_v7, %v655_v8 }
 0x58e   :  { %vm659_vm5 = vcmp.eq.s32.totalorder %v638_v52, %v658_v9 }
 0x58f   :  { %v812_v10 = vsel %vm659_vm5, 1.0, %v923_v1 }
 0x590   :  { %893 = vmatmul.mubr.msk.f32.vlgmr.msra.gmra.mxu1 %vm25_vm2, %v812_v10 }
 0x650   :  { %v734_v11 = vpop.f32.mrf.mxu1 }
 0x651   :  { %743 = vrot.lane.b32.xlu1 %v734_v11, %s926_s4 }
 0x652   :  { %v894_v12 = vpop.f32.mrf.mxu1 }
 0x655   :  { %747 = vrot.lane.b32.xlu1 %v636_v49, %s927_s5 }
 0x6c3   :  { %v744_v14 = vpop.permute.xlu1 %743 }
 0x6c4   :  { %v752_v16 = vsel %vm751_vm6, %v750_v15, %v744_v14 }
 0x6c7   :  { %v748_v1 = vpop.permute.xlu1 %747 }
 0x6c8   :  { %v754_v17 = vsel %vm753_vm7, %v752_v16, %v748_v1 }
 0x6c9   :  { %756 = vst.msk [vmem:[#allocation2] sm:$0xff] %vm755_vm8, %v754_v17 }
 0x6ca   :  { %912 = shalt.err (!%p909_p4)
}
 0x6cb   :  { %766 = dma.vmem_to_hbm [thread:$0]  %s764_s6, 128, %s1087_s3, [#allocation3]  }
 0x6cc   :  { %921 = dma.done.wait [#allocation3], 128  }
 0x6cd   :  { %922 = vsyncadd [#allocation3], 4294967168 }
 0x6ce   :  { %770 = vsyncpa [#allocation3], 1 }

</bundles_post_ra>
